<compile_context>
chip_gen: v5e
topology: v5e:2x2
jax: 0.10.0
libtpu: 0.0.40
codegen_flags: <defaults>
</compile_context>

<pallas_src>
import math

import jax
import jax.numpy as jnp
from jax.experimental import pallas as pl
from jax.experimental.pallas import tpu as pltpu

# ---------------- configuration (small, consistent with the module) ----------------
BATCH = 2
SEQ = 8
EMB_DIM = 32
NUM_HEADS = 4
HEAD_DIM = EMB_DIM // NUM_HEADS


def mha_kernel(x_ref, wqkv_ref, wo_ref, out_ref, attnw_ref):
    """Whole forward pass in one invocation.

    x_ref     : (T, E)       flattened tokens, T = B*S
    wqkv_ref  : (E, 3E)      [Wq.T | Wk.T | Wv.T]  (pre-transposed in the wrapper)
    wo_ref    : (H, Hd, E)   Wo.T reshaped per head (pre-done in the wrapper)
    out_ref   : (T, E)       attention output (flattened tokens)
    attnw_ref : (T, H*S)     lane-dense attention-weight slab
    """
    B, S, E, H, Hd = BATCH, SEQ, EMB_DIM, NUM_HEADS, HEAD_DIM

    x = x_ref[...]                                                        # (T, E) f32

    # Fused Q/K/V projection: one wide MXU push, weights already transposed.
    qkv = jnp.dot(x, wqkv_ref[...], preferred_element_type=jnp.float32)   # (T, 3E)

    inv_sqrt_d = 1.0 / math.sqrt(Hd)
    q = qkv[:, 0 * E:1 * E] * inv_sqrt_d        # scale folded in once, right after projection
    k = qkv[:, 1 * E:2 * E]
    v = qkv[:, 2 * E:3 * E]

    # Re-expose the batch axis for attention (leading-dim split only, layout-friendly).
    q3 = q.reshape(B, S, E)
    k3 = k.reshape(B, S, E)
    v3 = v.reshape(B, S, E)

    out_acc = None
    attn_parts = []
    for h in range(H):                            # static loop over 4 heads
        lo = h * Hd
        qh = q3[:, :, lo:lo + Hd]                 # (B, S, Hd)
        kh = k3[:, :, lo:lo + Hd]                 # (B, S, Hd)
        vh = v3[:, :, lo:lo + Hd]                 # (B, S, Hd)

        # Scores: contraction on the last axis -- no transposed operand materialized.
        scores = jnp.einsum('bqd,bkd->bqk', qh, kh,
                            preferred_element_type=jnp.float32)           # (B, S, S)

        # Numerically stable softmax; reciprocal goes to the EUP slot.
        m = jnp.max(scores, axis=-1, keepdims=True)
        e = jnp.exp(scores - m)
        denom = jnp.sum(e, axis=-1, keepdims=True)
        probs = e * pl.reciprocal(denom, approx=True)                     # (B, S, S)

        attn_parts.append(probs.reshape(B * S, S))                        # (T, S)

        ctx_h = jnp.einsum('bqk,bkd->bqd', probs, vh,
                           preferred_element_type=jnp.float32)            # (B, S, Hd)

        # Output projection accumulated over heads: no concat, no ctx scratch,
        # no lane-sliced masked writes.
        contrib = jnp.dot(ctx_h.reshape(B * S, Hd), wo_ref[h],
                          preferred_element_type=jnp.float32)             # (T, E)
        out_acc = contrib if out_acc is None else out_acc + contrib

    out_ref[...] = out_acc.astype(out_ref.dtype)                          # lane-dense (T, E)
    # Single lane-dense store of all heads' attention weights.
    attnw_ref[...] = jnp.concatenate(attn_parts, axis=-1).astype(attnw_ref.dtype)  # (T, H*S)


@jax.jit
def multi_head_attention(x, wq, wk, wv, wo):
    """x: (B, S, E) float32. Returns (attn_output (B,S,E), attn_weights (B,H,S,S))."""
    B, S, E = x.shape
    H, Hd = NUM_HEADS, HEAD_DIM
    T = B * S

    # One-time weight relayout OUTSIDE the kernel (cheap XLA ops, not per-step work).
    wqkv_t = jnp.concatenate([wq.T, wk.T, wv.T], axis=1)   # (E, 3E)
    wo_h = wo.T.reshape(H, Hd, E)                          # (H, Hd, E)
    x_flat = x.reshape(T, E)                               # (T, E)

    out_flat, attnw_slab = pl.pallas_call(
        mha_kernel,
        grid=(1,),                                         # single step: fixed overhead paid once
        in_specs=[
            pl.BlockSpec((T, E), lambda i: (0, 0)),            # x (flattened tokens)
            pl.BlockSpec((E, 3 * E), lambda i: (0, 0)),        # fused, pre-transposed QKV weight
            pl.BlockSpec((H, Hd, E), lambda i: (0, 0, 0)),     # per-head output-projection weight
        ],
        out_specs=(
            pl.BlockSpec((T, E), lambda i: (0, 0)),            # attn_output (flattened)
            pl.BlockSpec((T, H * S), lambda i: (0, 0)),        # lane-dense attn-weight slab
        ),
        out_shape=(
            jax.ShapeDtypeStruct((T, E), jnp.float32),
            jax.ShapeDtypeStruct((T, H * S), jnp.float32),
        ),
        compiler_params=pltpu.CompilerParams(
            dimension_semantics=("arbitrary",)),
    )(x_flat, wqkv_t, wo_h)

    attn_output = out_flat.reshape(B, S, E)
    # slab[b*S+q, h*S+k] -> (B, H, S, S); wrapper-side reshape/transpose is free layout plumbing.
    attn_weights = attnw_slab.reshape(B, S, H, S).transpose(0, 2, 1, 3)
    return attn_output, attn_weights


def reference_mha(x, wq, wk, wv, wo):
    """Pure-JAX reference mirroring the PyTorch module (self-attention, no mask, no dropout)."""
    B, S, E = x.shape
    H, Hd = NUM_HEADS, HEAD_DIM
    hp = jax.lax.Precision.HIGHEST
    q = jnp.einsum('bse,fe->bsf', x, wq, precision=hp)
    k = jnp.einsum('bse,fe->bsf', x, wk, precision=hp)
    v = jnp.einsum('bse,fe->bsf', x, wv, precision=hp)

    def to_heads(t):
        return t.reshape(B, S, H, Hd).transpose(0, 2, 1, 3)   # (B, H, S, Hd)

    qh, kh, vh = to_heads(q), to_heads(k), to_heads(v)
    scores = jnp.einsum('bhqd,bhkd->bhqk', qh, kh, precision=hp) / math.sqrt(Hd)
    probs = jax.nn.softmax(scores, axis=-1)
    ctx = jnp.einsum('bhqk,bhkd->bhqd', probs, vh, precision=hp)   # (B, H, S, Hd)
    ctx = ctx.transpose(0, 2, 1, 3).reshape(B, S, E)
    out = jnp.einsum('bse,fe->bsf', ctx, wo, precision=hp)
    return out, probs


if __name__ == "__main__":
    key = jax.random.PRNGKey(0)
    kx, kq, kk, kv, ko = jax.random.split(key, 5)

    x = jax.random.normal(kx, (BATCH, SEQ, EMB_DIM), dtype=jnp.float32)

    # Deterministic "Linear" weights, PyTorch (out_features, in_features) layout.
    scale = 1.0 / math.sqrt(EMB_DIM)
    wq = jax.random.uniform(kq, (EMB_DIM, EMB_DIM), jnp.float32, -scale, scale)
    wk = jax.random.uniform(kk, (EMB_DIM, EMB_DIM), jnp.float32, -scale, scale)
    wv = jax.random.uniform(kv, (EMB_DIM, EMB_DIM), jnp.float32, -scale, scale)
    wo = jax.random.uniform(ko, (EMB_DIM, EMB_DIM), jnp.float32, -scale, scale)

    out, attnw = multi_head_attention(x, wq, wk, wv, wo)
    jax.block_until_ready((out, attnw))

    ref_out, ref_attnw = reference_mha(x, wq, wk, wv, wo)
    assert out.shape == (BATCH, SEQ, EMB_DIM)
    assert attnw.shape == (BATCH, NUM_HEADS, SEQ, SEQ)
    # Tolerance absorbs the EUP approximate reciprocal used for the softmax denominator.
    assert jnp.allclose(out, ref_out, atol=1e-3, rtol=1e-3)
    assert jnp.allclose(attnw, ref_attnw, atol=1e-3, rtol=1e-3)

    # TODO(synk): dropout (drop_out=0.0 here) and optional padding/causal masks are not
    # exercised; mask support would add a masked-fill (-inf) before the softmax.
    print("KERNEL_OK")
</pallas_src>

<mosaic_0001>
module attributes {stable_mosaic.version = 11 : i64} {
  func.func @mha_kernel(%arg0: i32, %arg1: memref<16x32xf32, #tpu.memory_space<vmem>>, %arg2: memref<32x96xf32, #tpu.memory_space<vmem>>, %arg3: memref<4x8x32xf32, #tpu.memory_space<vmem>>, %arg4: memref<16x32xf32, #tpu.memory_space<vmem>>, %arg5: memref<16x32xf32, #tpu.memory_space<vmem>>) attributes {dimension_semantics = [#tpu.dimension_semantics<arbitrary>], iteration_bounds = array<i64: 1>, scalar_prefetch = 0 : i64, scratch_operands = 0 : i64, tpu.core_type = #tpu.core_type<tc>, window_params = [{pipeline_mode = #tpu.pipeline_mode<synchronous>, transform_indices = @transform_0, window_bounds = array<i64: 16, 32>}, {pipeline_mode = #tpu.pipeline_mode<synchronous>, transform_indices = @transform_1, window_bounds = array<i64: 32, 96>}, {pipeline_mode = #tpu.pipeline_mode<synchronous>, transform_indices = @transform_2, window_bounds = array<i64: 4, 8, 32>}, {pipeline_mode = #tpu.pipeline_mode<synchronous>, transform_indices = @transform_3, window_bounds = array<i64: 16, 32>}, {pipeline_mode = #tpu.pipeline_mode<synchronous>, transform_indices = @transform_4, window_bounds = array<i64: 16, 32>}]} {
    %c0 = arith.constant 0 : index
    %c0_0 = arith.constant 0 : index
    %0 = vector.load %arg1[%c0, %c0_0] : memref<16x32xf32, #tpu.memory_space<vmem>>, vector<16x32xf32>
    %c0_1 = arith.constant 0 : index
    %c0_2 = arith.constant 0 : index
    %1 = vector.load %arg2[%c0_1, %c0_2] : memref<32x96xf32, #tpu.memory_space<vmem>>, vector<32x96xf32>
    %cst = arith.constant dense<0.000000e+00> : vector<16x96xf32>
    %2 = tpu.matmul %0, %1, %cst {dimension_numbers = #tpu.dot_dimension_numbers<[1], [0], [0], [1], [0, 0, 1, 1], [], []>} : vector<16x32xf32>, vector<32x96xf32>, vector<16x96xf32> -> vector<16x96xf32>
    %3 = vector.extract_strided_slice %2 {offsets = [0, 0], sizes = [16, 32], strides = [1, 1]} : vector<16x96xf32> to vector<16x32xf32>
    %cst_3 = arith.constant 0.353553385 : f32
    %4 = vector.broadcast %cst_3 : f32 to vector<16x32xf32>
    %5 = arith.mulf %3, %4 : vector<16x32xf32>
    %6 = vector.extract_strided_slice %2 {offsets = [0, 32], sizes = [16, 32], strides = [1, 1]} : vector<16x96xf32> to vector<16x32xf32>
    %7 = vector.extract_strided_slice %2 {offsets = [0, 64], sizes = [16, 32], strides = [1, 1]} : vector<16x96xf32> to vector<16x32xf32>
    %8 = vector.shape_cast %5 : vector<16x32xf32> to vector<2x8x32xf32>
    %9 = vector.shape_cast %6 : vector<16x32xf32> to vector<2x8x32xf32>
    %10 = vector.shape_cast %7 : vector<16x32xf32> to vector<2x8x32xf32>
    %11 = vector.extract_strided_slice %8 {offsets = [0, 0, 0], sizes = [2, 8, 8], strides = [1, 1, 1]} : vector<2x8x32xf32> to vector<2x8x8xf32>
    %12 = vector.extract_strided_slice %9 {offsets = [0, 0, 0], sizes = [2, 8, 8], strides = [1, 1, 1]} : vector<2x8x32xf32> to vector<2x8x8xf32>
    %13 = vector.extract_strided_slice %10 {offsets = [0, 0, 0], sizes = [2, 8, 8], strides = [1, 1, 1]} : vector<2x8x32xf32> to vector<2x8x8xf32>
    "tpu.trace_start"() <{level = 10 : i32, message = "bqd,bkd->bqk"}> : () -> ()
    %cst_4 = arith.constant dense<0.000000e+00> : vector<2x8x8xf32>
    %14 = tpu.matmul %11, %12, %cst_4 {dimension_numbers = #tpu.dot_dimension_numbers<[2], [2], [1], [1], [0, 0, 0, 1, 1, 1], [0], [0]>} : vector<2x8x8xf32>, vector<2x8x8xf32>, vector<2x8x8xf32> -> vector<2x8x8xf32>
    "tpu.trace_stop"() : () -> ()
    %cst_5 = arith.constant dense<0xFF800000> : vector<2x8xf32>
    %15 = vector.multi_reduction <maximumf>, %14, %cst_5 [2] : vector<2x8x8xf32> to vector<2x8xf32>
    %16 = vector.shape_cast %15 : vector<2x8xf32> to vector<2x8x1xf32>
    %17 = vector.broadcast %16 : vector<2x8x1xf32> to vector<2x8x8xf32>
    %18 = arith.subf %14, %17 : vector<2x8x8xf32>
    %19 = math.exp %18 : vector<2x8x8xf32>
    %cst_6 = arith.constant dense<0.000000e+00> : vector<2x8xf32>
    %20 = vector.multi_reduction <add>, %19, %cst_6 [2] : vector<2x8x8xf32> to vector<2x8xf32>
    %21 = vector.shape_cast %20 : vector<2x8xf32> to vector<2x8x1xf32>
    %22 = tpu.reciprocal %21 {approx = true} : vector<2x8x1xf32> -> vector<2x8x1xf32>
    %23 = vector.broadcast %22 : vector<2x8x1xf32> to vector<2x8x8xf32>
    %24 = arith.mulf %19, %23 : vector<2x8x8xf32>
    %25 = vector.shape_cast %24 : vector<2x8x8xf32> to vector<16x8xf32>
    "tpu.trace_start"() <{level = 10 : i32, message = "bqk,bkd->bqd"}> : () -> ()
    %cst_7 = arith.constant dense<0.000000e+00> : vector<2x8x8xf32>
    %26 = tpu.matmul %24, %13, %cst_7 {dimension_numbers = #tpu.dot_dimension_numbers<[2], [1], [1], [2], [0, 0, 0, 1, 1, 2], [0], [0]>} : vector<2x8x8xf32>, vector<2x8x8xf32>, vector<2x8x8xf32> -> vector<2x8x8xf32>
    "tpu.trace_stop"() : () -> ()
    %27 = vector.shape_cast %26 : vector<2x8x8xf32> to vector<16x8xf32>
    %c0_8 = arith.constant 0 : index
    %c0_9 = arith.constant 0 : index
    %c0_10 = arith.constant 0 : index
    %28 = vector.load %arg3[%c0_8, %c0_9, %c0_10] : memref<4x8x32xf32, #tpu.memory_space<vmem>>, vector<1x8x32xf32>
    %29 = vector.shape_cast %28 : vector<1x8x32xf32> to vector<8x32xf32>
    %cst_11 = arith.constant dense<0.000000e+00> : vector<16x32xf32>
    %30 = tpu.matmul %27, %29, %cst_11 {dimension_numbers = #tpu.dot_dimension_numbers<[1], [0], [0], [1], [0, 0, 1, 1], [], []>} : vector<16x8xf32>, vector<8x32xf32>, vector<16x32xf32> -> vector<16x32xf32>
    %31 = vector.extract_strided_slice %8 {offsets = [0, 0, 8], sizes = [2, 8, 8], strides = [1, 1, 1]} : vector<2x8x32xf32> to vector<2x8x8xf32>
    %32 = vector.extract_strided_slice %9 {offsets = [0, 0, 8], sizes = [2, 8, 8], strides = [1, 1, 1]} : vector<2x8x32xf32> to vector<2x8x8xf32>
    %33 = vector.extract_strided_slice %10 {offsets = [0, 0, 8], sizes = [2, 8, 8], strides = [1, 1, 1]} : vector<2x8x32xf32> to vector<2x8x8xf32>
    "tpu.trace_start"() <{level = 10 : i32, message = "bqd,bkd->bqk"}> : () -> ()
    %cst_12 = arith.constant dense<0.000000e+00> : vector<2x8x8xf32>
    %34 = tpu.matmul %31, %32, %cst_12 {dimension_numbers = #tpu.dot_dimension_numbers<[2], [2], [1], [1], [0, 0, 0, 1, 1, 1], [0], [0]>} : vector<2x8x8xf32>, vector<2x8x8xf32>, vector<2x8x8xf32> -> vector<2x8x8xf32>
    "tpu.trace_stop"() : () -> ()
    %cst_13 = arith.constant dense<0xFF800000> : vector<2x8xf32>
    %35 = vector.multi_reduction <maximumf>, %34, %cst_13 [2] : vector<2x8x8xf32> to vector<2x8xf32>
    %36 = vector.shape_cast %35 : vector<2x8xf32> to vector<2x8x1xf32>
    %37 = vector.broadcast %36 : vector<2x8x1xf32> to vector<2x8x8xf32>
    %38 = arith.subf %34, %37 : vector<2x8x8xf32>
    %39 = math.exp %38 : vector<2x8x8xf32>
    %cst_14 = arith.constant dense<0.000000e+00> : vector<2x8xf32>
    %40 = vector.multi_reduction <add>, %39, %cst_14 [2] : vector<2x8x8xf32> to vector<2x8xf32>
    %41 = vector.shape_cast %40 : vector<2x8xf32> to vector<2x8x1xf32>
    %42 = tpu.reciprocal %41 {approx = true} : vector<2x8x1xf32> -> vector<2x8x1xf32>
    %43 = vector.broadcast %42 : vector<2x8x1xf32> to vector<2x8x8xf32>
    %44 = arith.mulf %39, %43 : vector<2x8x8xf32>
    %45 = vector.shape_cast %44 : vector<2x8x8xf32> to vector<16x8xf32>
    "tpu.trace_start"() <{level = 10 : i32, message = "bqk,bkd->bqd"}> : () -> ()
    %cst_15 = arith.constant dense<0.000000e+00> : vector<2x8x8xf32>
    %46 = tpu.matmul %44, %33, %cst_15 {dimension_numbers = #tpu.dot_dimension_numbers<[2], [1], [1], [2], [0, 0, 0, 1, 1, 2], [0], [0]>} : vector<2x8x8xf32>, vector<2x8x8xf32>, vector<2x8x8xf32> -> vector<2x8x8xf32>
    "tpu.trace_stop"() : () -> ()
    %47 = vector.shape_cast %46 : vector<2x8x8xf32> to vector<16x8xf32>
    %c1 = arith.constant 1 : index
    %c0_16 = arith.constant 0 : index
    %c0_17 = arith.constant 0 : index
    %48 = vector.load %arg3[%c1, %c0_16, %c0_17] : memref<4x8x32xf32, #tpu.memory_space<vmem>>, vector<1x8x32xf32>
    %49 = vector.shape_cast %48 : vector<1x8x32xf32> to vector<8x32xf32>
    %cst_18 = arith.constant dense<0.000000e+00> : vector<16x32xf32>
    %50 = tpu.matmul %47, %49, %cst_18 {dimension_numbers = #tpu.dot_dimension_numbers<[1], [0], [0], [1], [0, 0, 1, 1], [], []>} : vector<16x8xf32>, vector<8x32xf32>, vector<16x32xf32> -> vector<16x32xf32>
    %51 = arith.addf %30, %50 : vector<16x32xf32>
    %52 = vector.extract_strided_slice %8 {offsets = [0, 0, 16], sizes = [2, 8, 8], strides = [1, 1, 1]} : vector<2x8x32xf32> to vector<2x8x8xf32>
    %53 = vector.extract_strided_slice %9 {offsets = [0, 0, 16], sizes = [2, 8, 8], strides = [1, 1, 1]} : vector<2x8x32xf32> to vector<2x8x8xf32>
    %54 = vector.extract_strided_slice %10 {offsets = [0, 0, 16], sizes = [2, 8, 8], strides = [1, 1, 1]} : vector<2x8x32xf32> to vector<2x8x8xf32>
    "tpu.trace_start"() <{level = 10 : i32, message = "bqd,bkd->bqk"}> : () -> ()
    %cst_19 = arith.constant dense<0.000000e+00> : vector<2x8x8xf32>
    %55 = tpu.matmul %52, %53, %cst_19 {dimension_numbers = #tpu.dot_dimension_numbers<[2], [2], [1], [1], [0, 0, 0, 1, 1, 1], [0], [0]>} : vector<2x8x8xf32>, vector<2x8x8xf32>, vector<2x8x8xf32> -> vector<2x8x8xf32>
    "tpu.trace_stop"() : () -> ()
    %cst_20 = arith.constant dense<0xFF800000> : vector<2x8xf32>
    %56 = vector.multi_reduction <maximumf>, %55, %cst_20 [2] : vector<2x8x8xf32> to vector<2x8xf32>
    %57 = vector.shape_cast %56 : vector<2x8xf32> to vector<2x8x1xf32>
    %58 = vector.broadcast %57 : vector<2x8x1xf32> to vector<2x8x8xf32>
    %59 = arith.subf %55, %58 : vector<2x8x8xf32>
    %60 = math.exp %59 : vector<2x8x8xf32>
    %cst_21 = arith.constant dense<0.000000e+00> : vector<2x8xf32>
    %61 = vector.multi_reduction <add>, %60, %cst_21 [2] : vector<2x8x8xf32> to vector<2x8xf32>
    %62 = vector.shape_cast %61 : vector<2x8xf32> to vector<2x8x1xf32>
    %63 = tpu.reciprocal %62 {approx = true} : vector<2x8x1xf32> -> vector<2x8x1xf32>
    %64 = vector.broadcast %63 : vector<2x8x1xf32> to vector<2x8x8xf32>
    %65 = arith.mulf %60, %64 : vector<2x8x8xf32>
    %66 = vector.shape_cast %65 : vector<2x8x8xf32> to vector<16x8xf32>
    "tpu.trace_start"() <{level = 10 : i32, message = "bqk,bkd->bqd"}> : () -> ()
    %cst_22 = arith.constant dense<0.000000e+00> : vector<2x8x8xf32>
    %67 = tpu.matmul %65, %54, %cst_22 {dimension_numbers = #tpu.dot_dimension_numbers<[2], [1], [1], [2], [0, 0, 0, 1, 1, 2], [0], [0]>} : vector<2x8x8xf32>, vector<2x8x8xf32>, vector<2x8x8xf32> -> vector<2x8x8xf32>
    "tpu.trace_stop"() : () -> ()
    %68 = vector.shape_cast %67 : vector<2x8x8xf32> to vector<16x8xf32>
    %c2 = arith.constant 2 : index
    %c0_23 = arith.constant 0 : index
    %c0_24 = arith.constant 0 : index
    %69 = vector.load %arg3[%c2, %c0_23, %c0_24] : memref<4x8x32xf32, #tpu.memory_space<vmem>>, vector<1x8x32xf32>
    %70 = vector.shape_cast %69 : vector<1x8x32xf32> to vector<8x32xf32>
    %cst_25 = arith.constant dense<0.000000e+00> : vector<16x32xf32>
    %71 = tpu.matmul %68, %70, %cst_25 {dimension_numbers = #tpu.dot_dimension_numbers<[1], [0], [0], [1], [0, 0, 1, 1], [], []>} : vector<16x8xf32>, vector<8x32xf32>, vector<16x32xf32> -> vector<16x32xf32>
    %72 = arith.addf %51, %71 : vector<16x32xf32>
    %73 = vector.extract_strided_slice %8 {offsets = [0, 0, 24], sizes = [2, 8, 8], strides = [1, 1, 1]} : vector<2x8x32xf32> to vector<2x8x8xf32>
    %74 = vector.extract_strided_slice %9 {offsets = [0, 0, 24], sizes = [2, 8, 8], strides = [1, 1, 1]} : vector<2x8x32xf32> to vector<2x8x8xf32>
    %75 = vector.extract_strided_slice %10 {offsets = [0, 0, 24], sizes = [2, 8, 8], strides = [1, 1, 1]} : vector<2x8x32xf32> to vector<2x8x8xf32>
    "tpu.trace_start"() <{level = 10 : i32, message = "bqd,bkd->bqk"}> : () -> ()
    %cst_26 = arith.constant dense<0.000000e+00> : vector<2x8x8xf32>
    %76 = tpu.matmul %73, %74, %cst_26 {dimension_numbers = #tpu.dot_dimension_numbers<[2], [2], [1], [1], [0, 0, 0, 1, 1, 1], [0], [0]>} : vector<2x8x8xf32>, vector<2x8x8xf32>, vector<2x8x8xf32> -> vector<2x8x8xf32>
    "tpu.trace_stop"() : () -> ()
    %cst_27 = arith.constant dense<0xFF800000> : vector<2x8xf32>
    %77 = vector.multi_reduction <maximumf>, %76, %cst_27 [2] : vector<2x8x8xf32> to vector<2x8xf32>
    %78 = vector.shape_cast %77 : vector<2x8xf32> to vector<2x8x1xf32>
    %79 = vector.broadcast %78 : vector<2x8x1xf32> to vector<2x8x8xf32>
    %80 = arith.subf %76, %79 : vector<2x8x8xf32>
    %81 = math.exp %80 : vector<2x8x8xf32>
    %cst_28 = arith.constant dense<0.000000e+00> : vector<2x8xf32>
    %82 = vector.multi_reduction <add>, %81, %cst_28 [2] : vector<2x8x8xf32> to vector<2x8xf32>
    %83 = vector.shape_cast %82 : vector<2x8xf32> to vector<2x8x1xf32>
    %84 = tpu.reciprocal %83 {approx = true} : vector<2x8x1xf32> -> vector<2x8x1xf32>
    %85 = vector.broadcast %84 : vector<2x8x1xf32> to vector<2x8x8xf32>
    %86 = arith.mulf %81, %85 : vector<2x8x8xf32>
    %87 = vector.shape_cast %86 : vector<2x8x8xf32> to vector<16x8xf32>
    "tpu.trace_start"() <{level = 10 : i32, message = "bqk,bkd->bqd"}> : () -> ()
    %cst_29 = arith.constant dense<0.000000e+00> : vector<2x8x8xf32>
    %88 = tpu.matmul %86, %75, %cst_29 {dimension_numbers = #tpu.dot_dimension_numbers<[2], [1], [1], [2], [0, 0, 0, 1, 1, 2], [0], [0]>} : vector<2x8x8xf32>, vector<2x8x8xf32>, vector<2x8x8xf32> -> vector<2x8x8xf32>
    "tpu.trace_stop"() : () -> ()
    %89 = vector.shape_cast %88 : vector<2x8x8xf32> to vector<16x8xf32>
    %c3 = arith.constant 3 : index
    %c0_30 = arith.constant 0 : index
    %c0_31 = arith.constant 0 : index
    %90 = vector.load %arg3[%c3, %c0_30, %c0_31] : memref<4x8x32xf32, #tpu.memory_space<vmem>>, vector<1x8x32xf32>
    %91 = vector.shape_cast %90 : vector<1x8x32xf32> to vector<8x32xf32>
    %cst_32 = arith.constant dense<0.000000e+00> : vector<16x32xf32>
    %92 = tpu.matmul %89, %91, %cst_32 {dimension_numbers = #tpu.dot_dimension_numbers<[1], [0], [0], [1], [0, 0, 1, 1], [], []>} : vector<16x8xf32>, vector<8x32xf32>, vector<16x32xf32> -> vector<16x32xf32>
    %93 = arith.addf %72, %92 : vector<16x32xf32>
    %c0_33 = arith.constant 0 : index
    %c0_34 = arith.constant 0 : index
    %94 = vector.load %arg4[%c0_33, %c0_34] : memref<16x32xf32, #tpu.memory_space<vmem>>, vector<16x32xf32>
    tpu.vector_store %arg4[%c0_33, %c0_34], %93 {strides = array<i32>} : memref<16x32xf32, #tpu.memory_space<vmem>>, vector<16x32xf32>,
    %95 = tpu.concatenate %25, %45, %66, %87 in 1 : vector<16x8xf32>, vector<16x8xf32>, vector<16x8xf32>, vector<16x8xf32> -> vector<16x32xf32>
    %c0_35 = arith.constant 0 : index
    %c0_36 = arith.constant 0 : index
    %96 = vector.load %arg5[%c0_35, %c0_36] : memref<16x32xf32, #tpu.memory_space<vmem>>, vector<16x32xf32>
    tpu.vector_store %arg5[%c0_35, %c0_36], %95 {strides = array<i32>} : memref<16x32xf32, #tpu.memory_space<vmem>>, vector<16x32xf32>,
    return
  }
  func.func @transform_0(%arg0: i32) -> (i32, i32) {
    %c0_i32 = arith.constant 0 : i32
    %c0_i32_0 = arith.constant 0 : i32
    %c0_i32_1 = arith.constant 0 : i32
    return %c0_i32, %c0_i32_0 : i32, i32
  }
  func.func @transform_1(%arg0: i32) -> (i32, i32) {
    %c0_i32 = arith.constant 0 : i32
    %c0_i32_0 = arith.constant 0 : i32
    %c0_i32_1 = arith.constant 0 : i32
    return %c0_i32, %c0_i32_0 : i32, i32
  }
  func.func @transform_2(%arg0: i32) -> (i32, i32, i32) {
    %c0_i32 = arith.constant 0 : i32
    %c0_i32_0 = arith.constant 0 : i32
    %c0_i32_1 = arith.constant 0 : i32
    %c0_i32_2 = arith.constant 0 : i32
    return %c0_i32, %c0_i32_0, %c0_i32_1 : i32, i32, i32
  }
  func.func @transform_3(%arg0: i32) -> (i32, i32) {
    %c0_i32 = arith.constant 0 : i32
    %c0_i32_0 = arith.constant 0 : i32
    %c0_i32_1 = arith.constant 0 : i32
    return %c0_i32, %c0_i32_0 : i32, i32
  }
  func.func @transform_4(%arg0: i32) -> (i32, i32) {
    %c0_i32 = arith.constant 0 : i32
    %c0_i32_0 = arith.constant 0 : i32
    %c0_i32_1 = arith.constant 0 : i32
    return %c0_i32, %c0_i32_0 : i32, i32
  }
}

</mosaic_0001>

<bundles_post_ra>
// kernel: multi_head_attention.1
= control target key start
LH: loop header
LB: loop body
LE: loop exit
PB: predicated region body
PF: predicated region fallthrough
CT: control target
= control target key end

     0   :  { %s1075_s0 = inlined_call_operand.vmem [shape: f32[16,32], index: 0, kind: input, shape index: {}]   ;;  %s1076_s1 = inlined_call_operand.vmem [shape: f32[32,96], index: 1, kind: input, shape index: {}]   ;;  %s1077_s2 = inlined_call_operand.vmem [shape: f32[4,8,32], index: 2, kind: input, shape index: {}]   ;;  %s1078_s3 = inlined_call_operand.hbm [shape: f32[16,32], index: 3, kind: output, shape index: {0}]   ;;  %s1079_s4 = inlined_call_operand.vmem [shape: f32[16,32], index: 4, kind: output, shape index: {1}]  }
   0x1   :  { %v22_v0 = vld [vmem:[%s1076_s1 + $0x18] sm:$0xff]  ;;  %v21_v1 = vld [vmem:[%s1076_s1 + $0x10] sm:$0xff] }
   0x2   :  { %42 = vmatpush.msra.mxu0 %v22_v0 }
   0x3   :  { %10 = vsyncpa [#allocation3], 0  ;;  %v20_v2 = vld [vmem:[%s1076_s1 + $0x8] sm:$0xff]  ;;  %v19_v3 = vld [vmem:[%s1076_s1] sm:$0xff]  ;;  %vm23_vm0 = vcmask 261120   ;;  %s866_s25 = smov 64  }
   0x4   :  { %43 = vmatpush.msra.mxu0 %v21_v1  ;;  %v17_v4 = vld [vmem:[%s1075_s0] sm:$0xff]  ;;  %s867_s26 = smov 96   ;;  %s868_s27 = smov 88   ;;  %vm58_vm1 = vcmask 64512   ;;  %v18_v10 = vld [vmem:[%s1075_s0 + $0x8] sm:$0xff]  ;;  %vm725_vm2 = vcmask 130048  }
   0x5   :  { %s869_s1 = smov 120   ;;  %v186_v25 = vld [vmem:[%s1077_s2] sm:$0xff]  ;;  %s870_s5 = smov 80   ;;  %v769_v56 = vld [vmem:[%s1077_s2 + $0x8] sm:$0xff]  ;;  %vm728_vm3 = vcmask 195584  }
   0x6   :  { %44 = vmatpush.msra.mxu0 %v20_v2  ;;  %s871_s6 = smov 56   ;;  %s872_s7 = smov 112  }
   0x7   :  { %s873_s10 = smov 48   ;;  %s874_s11 = smov 72  }
   0x8   :  { %45 = vmatpush.msra.mxu0 %v19_v3  ;;  %s875_s12 = smov 104   ;;  %s876_s15 = smov 8  }
   0x9   :  { %755 = vmatmul.msk.f32.vlgmr.msra.gmra.mxu0 %vm23_vm0, %v17_v4  ;;  %s877_s16 = smov 40   ;;  %s878_s17 = smov 16  }
   0xa   :  { %369 = vmatpush.msrb.mxu0 %v186_v25  ;;  %s879_s18 = smov 24   ;;  %s880_s24 = smov [#allocation2]  }
  0x11   :  { %756 = vmatmul.msk.f32.gmra.mxu0 %vm23_vm0, %v18_v10 }
  0x86   :  { %v923_v5 = vpop.f32.mrf.mxu0 }
  0x87   :  { %134 = vrot.lane.b32.xlu2 %v923_v5, %s866_s25  ;;  %56 = vrot.lane.b32.xlu0 %v923_v5, %s867_s26  ;;  %v931_v6 = vmul.f32 0.35355338, %v923_v5 }
  0x8e   :  { %v945_v18 = vpop.f32.mrf.mxu0 }
  0x8f   :  { %189 = vrot.lane.b32.xlu2 %v923_v5, %s868_s27  ;;  %v955_v24 = vmul.f32 0.35355338, %v945_v18 }
  0x97   :  { %187 = vrot.lane.b32.xlu2 %v931_v6, %s869_s1 }
  0xe1   :  { %v135_v7 = vpop.permute.xlu2 %134 }
  0xe9   :  { %v190_v9 = vpop.permute.xlu2 %189 }
  0xf1   :  { %v188_v22 = vpop.permute.xlu2 %187 }
  0xf9   :  { %v57_v8 = vpop.permute.xlu0 %56 }
  0xfa   :  { %757 = vmatpush.xpose.msk.msra.mxu1 %vm58_vm1, %v57_v8 }
  0xfd   :  { %758 = vmatmul.msk.f32.vlgmr.msra.gmra.mxu1 %vm58_vm1, %v931_v6 }
  0xfe   :  { %155 = vmatpush.msrb.mxu1 %v135_v7 }
 0x100   :  { %763 = vmatpush.xpose.msk.msra.mxu1 %vm58_vm1, %v190_v9 }
 0x17a   :  { %v81_v11 = vpop.f32.mrf.mxu1 }
 0x17b   :  { %v112_v12 = vsel %vm58_vm1, %v81_v11, -inf }
 0x17c   :  { %113 = vmax.xlane.f32.xlu0 %v112_v12 }
 0x1ef   :  { %v114_v13 = vpop.xlane.xlu0 %113 }
 0x1f0   :  { %v118_v14 = vsub.f32 %v81_v11, %v114_v13 }
 0x1f2   :  { %v120_v15 = vmul.f32 1.442695, %v118_v14 }
 0x1f4   :  { %808 = vpow2.f32 %v120_v15 }
 0x1fa   :  { %v809_v16 = vpop.eup %808 }
 0x1fb   :  { %v124_v17 = vsel %vm58_vm1, %v809_v16, 0.0 }
 0x1fc   :  { %125 = vadd.xlane.f32.xlu1 %v124_v17 }
 0x215   :  { %85 = vrot.lane.b32.xlu1 %v945_v18, %s867_s26 }
 0x26f   :  { %v126_v19 = vpop.xlane.xlu1 %125 }
 0x270   :  { %810 = vrcp.f32 %v126_v19 }
 0x276   :  { %v811_v20 = vpop.eup %810 }
 0x277   :  { %v948_v21 = vmul.f32 %v811_v20, %v809_v16 }
 0x279   :  { %761 = vmatmul.msk.f32.vlgmr.msrb.gmra.mxu1 %vm58_vm1, %v948_v21 }
 0x281   :  { %764 = vmatmul.msk.f32.vlgmr.msra.gmra.mxu1 %vm58_vm1, %v188_v22 }
 0x287   :  { %v86_v23 = vpop.permute.xlu1 %85 }
 0x288   :  { %759 = vmatpush.xpose.msk.msra.mxu2 %vm58_vm1, %v86_v23 }
 0x28b   :  { %760 = vmatmul.msk.f32.vlgmr.msra.gmra.mxu2 %vm58_vm1, %v955_v24 }
 0x2f6   :  { %v157_v26 = vpop.f32.mrf.mxu1 }
 0x2f7   :  { %772 = vmatmul.msk.f32.vlgmr.msrb.gmra.mxu0 %vm58_vm1, %v157_v26 }
 0x2fe   :  { %v212_v27 = vpop.f32.mrf.mxu1 }
 0x2ff   :  { %v243_v28 = vsel %vm58_vm1, %v212_v27, -inf }
 0x300   :  { %244 = vmax.xlane.f32.xlu1 %v243_v28 }
 0x30e   :  { %v109_v29 = vpop.f32.mrf.mxu2 }
 0x30f   :  { %v115_v30 = vsel %vm58_vm1, %v109_v29, -inf }
 0x310   :  { %116 = vmax.xlane.f32.xlu2 %v115_v30  ;;  %v780_v30 = vld [vmem:[%s1077_s2 + $0x10] sm:$0xff] }
 0x319   :  { %215 = vrot.lane.b32.xlu1 %v955_v24, %s869_s1  ;;  %s881_s1 = smov 128  }
 0x328   :  { %160 = vrot.lane.b32.xlu2 %v945_v18, %s866_s25  ;;  %s737_s25 = sshll.u32 %s880_s24, 4  ;;  %s738_s25 = int_to_ptr.vmem [resolvable:$true] %s737_s25 }
 0x330   :  { %379 = vrot.lane.b32.xlu2 %v923_v5, %s870_s5 }
 0x373   :  { %v245_v37 = vpop.xlane.xlu1 %244 }
 0x374   :  { %v249_v38 = vsub.f32 %v212_v27, %v245_v37 }
 0x376   :  { %v251_v39 = vmul.f32 1.442695, %v249_v38 }
 0x383   :  { %v117_v31 = vpop.xlane.xlu2 %116 }
 0x384   :  { %v119_v32 = vsub.f32 %v109_v29, %v117_v31 }
 0x386   :  { %v122_v33 = vmul.f32 1.442695, %v119_v32 }
 0x388   :  { %812 = vpow2.f32 %v122_v33 }
 0x389   :  { %814 = vpow2.f32 %v251_v39 }
 0x38b   :  { %v161_v34 = vpop.permute.xlu2 %160  ;;  %v216_v46 = vpop.permute.xlu1 %215 }
 0x38c   :  { %181 = vmatpush.msra.mxu3 %v161_v34 }
 0x38e   :  { %v813_v35 = vpop.eup %812 }
 0x38f   :  { %v127_v36 = vsel %vm58_vm1, %v813_v35, 0.0  ;;  %v815_v40 = vpop.eup %814 }
 0x390   :  { %128 = vadd.xlane.f32.xlu0 %v127_v36  ;;  %v255_v41 = vsel %vm58_vm1, %v815_v40, 0.0 }
 0x393   :  { %v380_v48 = vpop.permute.xlu2 %379 }
 0x3a4   :  { %217 = vrot.lane.b32.xlu0 %v945_v18, %s868_s27  ;;  %s739_s27 = sshll.u32 %s1078_s3, 4  ;;  %s740_s27 = int_to_ptr.hbm [resolvable:$true] %s739_s27 }
 0x3ac   :  { %265 = vrot.lane.b32.xlu0 %v923_v5, %s871_s6 }
 0x3d6   :  { %256 = vadd.xlane.f32.xlu0 %v255_v41 }
 0x3ea   :  { %377 = vrot.lane.b32.xlu0 %v931_v6, %s872_s7 }
 0x403   :  { %v129_v42 = vpop.xlane.xlu0 %128 }
 0x404   :  { %816 = vrcp.f32 %v129_v42 }
 0x40a   :  { %v817_v43 = vpop.eup %816 }
 0x40b   :  { %v979_v44 = vmul.f32 %v817_v43, %v813_v35 }
 0x40d   :  { %762 = vmatmul.msk.f32.vlgmr.msra.gmra.mxu3 %vm58_vm1, %v979_v44 }
 0x416   :  { %v218_v45 = vpop.permute.xlu0 %217 }
 0x417   :  { %765 = vmatpush.xpose.msk.msrb.mxu2 %vm58_vm1, %v218_v45 }
 0x41a   :  { %766 = vmatmul.msk.f32.vlgmr.msrb.gmra.mxu2 %vm58_vm1, %v216_v46 }
 0x41b   :  { %340 = vmatpush.msra.mxu2 %v769_v56 }
 0x41d   :  { %530 = vmatpush.msrb.mxu2 %v780_v30 }
 0x41e   :  { %v266_v47 = vpop.permute.xlu0 %265 }
 0x41f   :  { %286 = vmatpush.msrb.mxu3 %v266_v47 }
 0x421   :  { %774 = vmatpush.xpose.msk.msra.mxu3 %vm58_vm1, %v380_v48 }
 0x449   :  { %v257_v49 = vpop.xlane.xlu0 %256 }
 0x44a   :  { %818 = vrcp.f32 %v257_v49 }
 0x450   :  { %v819_v50 = vpop.eup %818 }
 0x451   :  { %v986_v51 = vmul.f32 %v819_v50, %v815_v40 }
 0x453   :  { %767 = vmatmul.msk.f32.vlgmr.msrb.gmra.mxu3 %vm58_vm1, %v986_v51 }
 0x45c   :  { %v378_v52 = vpop.permute.xlu0 %377 }
 0x45d   :  { %775 = vmatmul.msk.f32.vlgmr.msra.gmra.mxu3 %vm58_vm1, %v378_v52 }
 0x490   :  { %v183_v53 = vpop.f32.mrf.mxu3 }
 0x491   :  { %773 = vmatmul.msk.f32.gmra.mxu0 %vm58_vm1, %v183_v53 }
 0x49d   :  { %v240_v54 = vpop.f32.mrf.mxu2 }
 0x49e   :  { %v246_v55 = vsel %vm58_vm1, %v240_v54, -inf }
 0x49f   :  { %247 = vmax.xlane.f32.xlu2 %v246_v55 }
 0x4b7   :  { %291 = vrot.lane.b32.xlu2 %v945_v18, %s871_s6 }
 0x4bf   :  { %455 = vrot.lane.b32.xlu2 %v923_v5, %s873_s10 }
 0x4c7   :  { %570 = vrot.lane.b32.xlu2 %v945_v18, %s874_s11 }
 0x4d6   :  { %v288_v57 = vpop.f32.mrf.mxu3 }
 0x4d7   :  { %770 = vmatmul.msk.f32.vlgmr.msra.gmra.mxu2 %vm58_vm1, %v288_v57 }
 0x4e0   :  { %v402_v58 = vpop.f32.mrf.mxu3 }
 0x4e1   :  { %v433_v59 = vsel %vm58_vm1, %v402_v58, -inf }
 0x4e2   :  { %434 = vmax.xlane.f32.xlu1 %v433_v59 }
 0x4fb   :  { %405 = vrot.lane.b32.xlu1 %v955_v24, %s872_s7 }
 0x512   :  { %v248_v60 = vpop.xlane.xlu2 %247 }
 0x513   :  { %v250_v61 = vsub.f32 %v240_v54, %v248_v60 }
 0x515   :  { %v253_v62 = vmul.f32 1.442695, %v250_v61 }
 0x517   :  { %820 = vpow2.f32 %v253_v62 }
 0x51a   :  { %v292_v63 = vpop.permute.xlu2 %291 }
 0x51b   :  { %312 = vmatpush.msrb.mxu1 %v292_v63 }
 0x51d   :  { %v821_v0 = vpop.eup %820 }
 0x51e   :  { %v258_v1 = vsel %vm58_vm1, %v821_v0, 0.0 }
 0x51f   :  { %259 = vadd.xlane.f32.xlu0 %v258_v1 }
 0x522   :  { %v456_v2 = vpop.permute.xlu2 %455 }
 0x523   :  { %476 = vmatpush.msrb.mxu3 %v456_v2  ;;  %v789_v2 = vld [vmem:[%s1077_s2 + $0x18] sm:$0xff] }
 0x52a   :  { %v571_v3 = vpop.permute.xlu2 %570 }
 0x52b   :  { %785 = vmatpush.xpose.msk.msra.mxu3 %vm58_vm1, %v571_v3 }
 0x533   :  { %407 = vrot.lane.b32.xlu0 %v945_v18, %s870_s5 }
 0x53b   :  { %542 = vrot.lane.b32.xlu0 %v923_v5, %s874_s11 }
 0x543   :  { %540 = vrot.lane.b32.xlu0 %v931_v6, %s875_s12 }
 0x555   :  { %v435_v4 = vpop.xlane.xlu1 %434 }
 0x556   :  { %v439_v7 = vsub.f32 %v402_v58, %v435_v4 }
 0x558   :  { %v441_v8 = vmul.f32 1.442695, %v439_v7 }
 0x55a   :  { %822 = vpow2.f32 %v441_v8 }
 0x560   :  { %v823_v9 = vpop.eup %822 }
 0x561   :  { %v445_v10 = vsel %vm58_vm1, %v823_v9, 0.0 }
 0x562   :  { %446 = vadd.xlane.f32.xlu1 %v445_v10 }
 0x56d   :  { %v406_v6 = vpop.permute.xlu1 %405 }
 0x57b   :  { %568 = vrot.lane.b32.xlu1 %v955_v24, %s875_s12  ;;  %v1021_v24 = vpop.f32.mrf.mxu0 }
 0x583   :  { %v1024_v27 = vpop.f32.mrf.mxu0 }
 0x592   :  { %v260_v11 = vpop.xlane.xlu0 %259 }
 0x593   :  { %824 = vrcp.f32 %v260_v11 }
 0x599   :  { %v825_v12 = vpop.eup %824 }
 0x59a   :  { %v264_v13 = vmul.f32 %v825_v12, %v821_v0 }
 0x59c   :  { %768 = vmatmul.msk.f32.vlgmr.msrb.gmra.mxu1 %vm58_vm1, %v264_v13 }
 0x5a5   :  { %v408_v14 = vpop.permute.xlu0 %407 }
 0x5a6   :  { %776 = vmatpush.xpose.msk.msra.mxu1 %vm58_vm1, %v408_v14 }
 0x5a9   :  { %777 = vmatmul.msk.f32.vlgmr.msra.gmra.mxu1 %vm58_vm1, %v406_v6 }
 0x5ad   :  { %v543_v15 = vpop.permute.xlu0 %542 }
 0x5ae   :  { %783 = vmatpush.xpose.msk.msra.mxu0 %vm58_vm1, %v543_v15 }
 0x5b5   :  { %v541_v16 = vpop.permute.xlu0 %540 }
 0x5b6   :  { %784 = vmatmul.msk.f32.vlgmr.msra.gmra.mxu0 %vm58_vm1, %v541_v16 }
 0x5d5   :  { %v447_v17 = vpop.xlane.xlu1 %446 }
 0x5d6   :  { %826 = vrcp.f32 %v447_v17 }
 0x5dc   :  { %v827_v19 = vpop.eup %826 }
 0x5dd   :  { %v453_v20 = vmul.f32 %v827_v19, %v823_v9 }
 0x5df   :  { %778 = vmatmul.msk.f32.vlgmr.msrb.gmra.mxu3 %vm58_vm1, %v453_v20 }
 0x5e0   :  { %693 = vmatpush.msrb.mxu3 %v789_v2 }
 0x5ed   :  { %v569_v22 = vpop.permute.xlu1 %568 }
 0x5ee   :  { %786 = vmatmul.msk.f32.vlgmr.msra.gmra.mxu3 %vm58_vm1, %v569_v22 }
 0x619   :  { %v314_v23 = vpop.f32.mrf.mxu1 }
 0x61a   :  { %771 = vmatmul.msk.f32.gmra.mxu2 %vm58_vm1, %v314_v23 }
 0x626   :  { %v430_v25 = vpop.f32.mrf.mxu1 }
 0x627   :  { %v436_v26 = vsel %vm58_vm1, %v430_v25, -inf }
 0x628   :  { %437 = vmax.xlane.f32.xlu2 %v436_v26 }
 0x633   :  { %v565_v28 = vpop.f32.mrf.mxu0 }
 0x634   :  { %v596_v29 = vsel %vm58_vm1, %v565_v28, -inf }
 0x635   :  { %597 = vmax.xlane.f32.xlu0 %v596_v29 }
 0x662   :  { %v478_v31 = vpop.f32.mrf.mxu3 }
 0x663   :  { %781 = vmatmul.msk.f32.vlgmr.msrb.gmra.mxu2 %vm58_vm1, %v478_v31 }
 0x671   :  { %v593_v32 = vpop.f32.mrf.mxu3 }
 0x672   :  { %v599_v33 = vsel %vm58_vm1, %v593_v32, -inf }
 0x673   :  { %600 = vmax.xlane.f32.xlu1 %v599_v33 }
 0x68c   :  { %481 = vrot.lane.b32.xlu1 %v945_v18, %s873_s10 }
 0x694   :  { %707 = vrot.lane.b32.xlu1 %v264_v13, %s876_s15  ;;  %v342_v13 = vpop.f32.mrf.mxu2 }
 0x695   :  { %v372_v15 = vadd.f32 %v1021_v24, %v342_v13 }
 0x69b   :  { %v438_v34 = vpop.xlane.xlu2 %437 }
 0x69c   :  { %v440_v35 = vsub.f32 %v430_v25, %v438_v34 }
 0x69d   :  { %v345_v14 = vpop.f32.mrf.mxu2 }
 0x69e   :  { %v443_v36 = vmul.f32 1.442695, %v440_v35 }
 0x6a0   :  { %828 = vpow2.f32 %v443_v36 }
 0x6a6   :  { %v829_v37 = vpop.eup %828 }
 0x6a7   :  { %v448_v38 = vsel %vm58_vm1, %v829_v37, 0.0 }
 0x6a8   :  { %v598_v39 = vpop.xlane.xlu0 %597  ;;  %449 = vadd.xlane.f32.xlu2 %v448_v38 }
 0x6a9   :  { %v602_v40 = vsub.f32 %v565_v28, %v598_v39 }
 0x6ab   :  { %v604_v41 = vmul.f32 1.442695, %v602_v40 }
 0x6ad   :  { %830 = vpow2.f32 %v604_v41 }
 0x6b3   :  { %v831_v42 = vpop.eup %830 }
 0x6b4   :  { %v608_v43 = vsel %vm58_vm1, %v831_v42, 0.0 }
 0x6b5   :  { %609 = vadd.xlane.f32.xlu0 %v608_v43 }
 0x6c9   :  { %618 = vrot.lane.b32.xlu0 %v923_v5, %s877_s16 }
 0x6d1   :  { %705 = vrot.lane.b32.xlu0 %v986_v51, %s876_s15 }
 0x6d9   :  { %711 = vrot.lane.b32.xlu0 %v453_v20, %s878_s17  ;;  %v375_v20 = vadd.f32 %v1024_v27, %v345_v14 }
 0x6e6   :  { %v601_v45 = vpop.xlane.xlu1 %600  ;;  %v532_v6 = vpop.f32.mrf.mxu2 }
 0x6e7   :  { %v603_v46 = vsub.f32 %v593_v32, %v601_v45  ;;  %v538_v16 = vadd.f32 %v532_v6, %v372_v15 }
 0x6e9   :  { %v606_v47 = vmul.f32 1.442695, %v603_v46 }
 0x6eb   :  { %832 = vpow2.f32 %v606_v47 }
 0x6f1   :  { %v833_v48 = vpop.eup %832 }
 0x6f2   :  { %v611_v49 = vsel %vm58_vm1, %v833_v48, 0.0 }
 0x6f3   :  { %612 = vadd.xlane.f32.xlu2 %v611_v49 }
 0x6fe   :  { %v482_v50 = vpop.permute.xlu1 %481 }
 0x6ff   :  { %502 = vmatpush.msrb.mxu1 %v482_v50 }
 0x70b   :  { %644 = vrot.lane.b32.xlu2 %v945_v18, %s877_s16 }
 0x71b   :  { %v450_v52 = vpop.xlane.xlu2 %449 }
 0x71c   :  { %834 = vrcp.f32 %v450_v52 }
 0x722   :  { %v835_v5 = vpop.eup %834 }
 0x723   :  { %v454_v53 = vmul.f32 %v835_v5, %v829_v37 }
 0x725   :  { %713 = vrot.lane.b32.xlu1 %v454_v53, %s878_s17  ;;  %779 = vmatmul.msk.f32.vlgmr.msrb.gmra.mxu1 %vm58_vm1, %v454_v53 }
 0x728   :  { %v610_v51 = vpop.xlane.xlu0 %609 }
 0x729   :  { %836 = vrcp.f32 %v610_v51 }
 0x72f   :  { %v837_v54 = vpop.eup %836 }
 0x730   :  { %v616_v55 = vmul.f32 %v837_v54, %v831_v42 }
 0x732   :  { %717 = vrot.lane.b32.xlu2 %v616_v55, %s879_s18 }
 0x73b   :  { %v619_v56 = vpop.permute.xlu0 %618 }
 0x73c   :  { %639 = vmatpush.msra.mxu1 %v619_v56 }
 0x73d   :  { %787 = vmatmul.msk.f32.vlgmr.msra.gmra.mxu1 %vm58_vm1, %v616_v55 }
 0x743   :  { %v706_v60 = vpop.permute.xlu0 %705 }
 0x744   :  { %v723_v62 = vsel %vm58_vm1, %v948_v21, %v706_v60  ;;  %v708_v21 = vpop.permute.xlu1 %707 }
 0x745   :  { %v724_v8 = vsel %vm58_vm1, %v979_v44, %v708_v21 }
 0x74b   :  { %v712_v61 = vpop.permute.xlu0 %711 }
 0x74c   :  { %v726_v63 = vsel %vm725_vm2, %v723_v62, %v712_v61 }
 0x766   :  { %v613_v57 = vpop.xlane.xlu2 %612 }
 0x767   :  { %838 = vrcp.f32 %v613_v57 }
 0x76d   :  { %v839_v18 = vpop.eup %838 }
 0x76e   :  { %v645_v58 = vpop.permute.xlu2 %644  ;;  %v617_v59 = vmul.f32 %v839_v18, %v833_v48 }
 0x76f   :  { %665 = vmatpush.msrb.mxu0 %v645_v58 }
 0x770   :  { %719 = vrot.lane.b32.xlu0 %v617_v59, %s879_s18  ;;  %788 = vmatmul.msk.f32.vlgmr.msrb.gmra.mxu0 %vm58_vm1, %v617_v59 }
 0x78c   :  { %v718_v0 = vpop.permute.xlu2 %717 }
 0x78d   :  { %v729_v1 = vsel %vm728_vm3, %v726_v63, %v718_v0 }
 0x78e   :  { %731 = vst.msk [vmem:[%s1079_s4] sm:$0xff] %vm23_vm0, %v729_v1 }
 0x797   :  { %v714_v7 = vpop.permute.xlu1 %713 }
 0x798   :  { %v727_v9 = vsel %vm725_vm2, %v724_v8, %v714_v7 }
 0x7a2   :  { %v504_v3 = vpop.f32.mrf.mxu1 }
 0x7a3   :  { %782 = vmatmul.msk.f32.gmra.mxu2 %vm58_vm1, %v504_v3 }
 0x7ba   :  { %v641_v4 = vpop.f32.mrf.mxu1 }
 0x7bb   :  { %790 = vmatmul.msk.f32.vlgmr.msrb.gmra.mxu3 %vm58_vm1, %v641_v4 }
 0x7e2   :  { %v720_v10 = vpop.permute.xlu0 %719 }
 0x7e3   :  { %v730_v11 = vsel %vm728_vm3, %v727_v9, %v720_v10 }
 0x7e4   :  { %732 = vst.msk [vmem:[%s1079_s4 + $0x8] sm:$0xff] %vm23_vm0, %v730_v11 }
 0x7ed   :  { %v667_v12 = vpop.f32.mrf.mxu0 }
 0x7ee   :  { %791 = vmatmul.msk.f32.gmra.mxu3 %vm58_vm1, %v667_v12 }
 0x826   :  { %v535_v19 = vpop.f32.mrf.mxu2 }
 0x827   :  { %v539_v22 = vadd.f32 %v535_v19, %v375_v20 }
 0x83e   :  { %v695_v44 = vpop.f32.mrf.mxu3 }
 0x83f   :  { %v701_v17 = vadd.f32 %v695_v44, %v538_v16 }
 0x841   :  { %703 = vst.msk [vmem:[#allocation2] sm:$0xff] %vm23_vm0, %v701_v17 }
 0x871   :  { %v698_v23 = vpop.f32.mrf.mxu3 }
 0x872   :  { %v702_v25 = vadd.f32 %v698_v23, %v539_v22 }
 0x874   :  { %704 = vst.msk [vmem:[#allocation2 + $0x8] sm:$0xff] %vm23_vm0, %v702_v25 }
 0x875   :  { %745 = dma.vmem_to_hbm [thread:$0]  %s738_s25, 256, %s740_s27, [#allocation3], %s881_s1, %s881_s1, %s876_s15  }
 0x876   :  { %864 = dma.done.wait [#allocation3], 256  }
 0x877   :  { %865 = vsyncadd [#allocation3], 4294967040 }
 0x878   :  { %754 = vsyncpa [#allocation3], 1 }

</bundles_post_ra>
